<compile_context>
chip_gen: v5e
topology: v5e:2x2
jax: 0.10.0
libtpu: 0.0.40
codegen_flags: <defaults>
</compile_context>

<pallas_src>
import functools

import jax
import jax.numpy as jnp
from jax.experimental import pallas as pl
from jax.experimental.pallas import tpu as pltpu


_CHUNK = 8                                # sublane rows processed per inner step
_TARGET_BLOCK_BYTES = 8 * 1024 * 1024     # input bytes per grid step (double-buffered)


def _grad_stats_kernel(x_ref, vx_ref, vy_ref, out_ref, *, nb, tb, h, w):
    """Partial gradient statistics for one block of flattened images.

    x_ref:   (tb, h*w) block, each row is one image flattened row-major.
    vx_ref:  (8, h*w) f32 mask, 1.0 where the pixel has a row below.
    vy_ref:  (8, h*w) f32 mask, 1.0 where the pixel has a column to the right.
    out_ref: (1, 8, 128) tile; lanes 0..5 of sublane 0 carry
             [sum_gx, min_gx, max_gx, sum_gy, min_gy, max_gy].
    """
    hw = h * w
    inf = jnp.float32(jnp.inf)
    ragged = (nb % tb) != 0                         # static Python bool

    # Hoisted once per block: boolean lane masks from the tiny resident input.
    vx_full = vx_ref[...] > jnp.float32(0.5)        # (8, hw)
    vy_full = vy_ref[...] > jnp.float32(0.5)

    def chunk_stats(xc, vx, vy, row_base):
        """Masked |grad| arrays for one chunk of rows."""
        if not jnp.issubdtype(xc.dtype, jnp.floating):
            xc = xc.astype(jnp.float32)
        # Vertical neighbour lives w lanes away; horizontal neighbour 1 lane away.
        # pltpu.roll is cyclic; wrap-around lanes are masked out by vx / vy.
        dx = jnp.abs(pltpu.roll(xc, hw - w, axis=1) - xc).astype(jnp.float32)
        dy = jnp.abs(pltpu.roll(xc, hw - 1, axis=1) - xc).astype(jnp.float32)
        dx0 = jnp.where(vx, dx, 0.0)                # used for sum AND max (dx >= 0)
        dxi = jnp.where(vx, dx, inf)                # used for min
        dy0 = jnp.where(vy, dy, 0.0)
        dyi = jnp.where(vy, dy, inf)
        if ragged:
            # Only compiled in when the grid has a ragged last block.
            rem = nb - (pl.program_id(0) * tb + row_base)
            rok = jax.lax.broadcasted_iota(jnp.int32, (xc.shape[0], 1), 0) < rem
            dx0 = jnp.where(rok, dx0, 0.0)
            dxi = jnp.where(rok, dxi, inf)
            dy0 = jnp.where(rok, dy0, 0.0)
            dyi = jnp.where(rok, dyi, inf)
        return dx0, dxi, dy0, dyi

    nchunks = tb // _CHUNK
    rem_rows = tb - nchunks * _CHUNK                # only nonzero when tb == nb < multiple of 8

    zeros = jnp.zeros((_CHUNK, hw), jnp.float32)
    infs = jnp.full((_CHUNK, hw), inf, jnp.float32)
    init = (zeros, infs, zeros, zeros, infs, zeros)

    def body(ci, carry):
        s_x, mn_x, mx_x, s_y, mn_y, mx_y = carry
        off = ci * _CHUNK
        if not isinstance(off, int):
            off = pl.multiple_of(off, _CHUNK)
        xc = x_ref[pl.ds(off, _CHUNK), :]
        dx0, dxi, dy0, dyi = chunk_stats(xc, vx_full, vy_full, off)
        return (s_x + dx0, jnp.minimum(mn_x, dxi), jnp.maximum(mx_x, dx0),
                s_y + dy0, jnp.minimum(mn_y, dyi), jnp.maximum(mx_y, dy0))

    if nchunks == 0:
        acc = init
    elif nchunks <= 8:
        # Short fixed trip count: unroll statically (full LLO visibility).
        acc = init
        for ci in range(nchunks):
            acc = body(ci, acc)
    else:
        acc = jax.lax.fori_loop(0, nchunks, body, init)

    s_x, mn_x, mx_x, s_y, mn_y, mx_y = acc

    # Single cross-lane/sublane reduce per statistic, once per block.
    sum_x = jnp.sum(s_x)
    min_x = jnp.min(mn_x)
    max_x = jnp.max(mx_x)
    sum_y = jnp.sum(s_y)
    min_y = jnp.min(mn_y)
    max_y = jnp.max(mx_y)

    if rem_rows > 0:
        # Static tail chunk (tb == nb and nb not a multiple of 8).
        base = nchunks * _CHUNK
        xt = x_ref[pl.ds(base, rem_rows), :]
        dx0, dxi, dy0, dyi = chunk_stats(
            xt, vx_full[:rem_rows], vy_full[:rem_rows], base)
        sum_x = sum_x + jnp.sum(dx0)
        min_x = jnp.minimum(min_x, jnp.min(dxi))
        max_x = jnp.maximum(max_x, jnp.max(dx0))
        sum_y = sum_y + jnp.sum(dy0)
        min_y = jnp.minimum(min_y, jnp.min(dyi))
        max_y = jnp.maximum(max_y, jnp.max(dy0))

    # Lane-dense (1, 8, 128) output tile; first 6 lanes carry the statistics.
    lane = jax.lax.broadcasted_iota(jnp.int32, (1, 8, 128), 2)
    row = jnp.zeros((1, 8, 128), jnp.float32)
    for idx, val in enumerate((sum_x, min_x, max_x, sum_y, min_y, max_y)):
        row = jnp.where(lane == idx, val, row)
    out_ref[...] = row


def loss_function_gradient(x):
    """x: (N, C, H, W) float array.  Returns a scalar float32 loss."""
    n, c, h, w = x.shape
    assert h >= 2 and w >= 2, "gradient loss needs H >= 2 and W >= 2"
    nb = n * c
    hw = h * w

    # Lane-dense layout: one flattened image per row (free bitcast reshape).
    xf = x.reshape(nb, hw)
    itemsize = xf.dtype.itemsize

    # Images per block: ~8 MiB tiles, sublane-aligned, ragged last block allowed.
    rows_budget = max(_CHUNK,
                      (_TARGET_BLOCK_BYTES // (hw * itemsize)) // _CHUNK * _CHUNK)
    if nb <= rows_budget:
        tb = nb
        half = nb // 2
        if nb % 2 == 0 and half >= _CHUNK and half % _CHUNK == 0:
            tb = half          # >= 2 blocks so both v7x TensorCores get work
    else:
        tb = rows_budget       # multiple of 8; last block may be ragged
    # TODO(synk): for gigantic single images (H*W*4B approaching VMEM) the
    # flattened row itself would need tiling along the lane (hw) axis as well.
    num_blocks = pl.cdiv(nb, tb)

    # Precomputed lane-validity masks, identical for every block (resident input).
    p = jnp.arange(hw, dtype=jnp.int32)
    vx_row = (p < (h - 1) * w).astype(jnp.float32)          # has a row below
    vy_row = ((p % w) != (w - 1)).astype(jnp.float32)       # has a column right
    vx_mask = jnp.tile(vx_row[None, :], (_CHUNK, 1))        # (8, hw)
    vy_mask = jnp.tile(vy_row[None, :], (_CHUNK, 1))        # (8, hw)

    kernel = functools.partial(_grad_stats_kernel, nb=nb, tb=tb, h=h, w=w)

    stats = pl.pallas_call(
        kernel,
        out_shape=jax.ShapeDtypeStruct((num_blocks, 8, 128), jnp.float32),
        grid_spec=pltpu.PrefetchScalarGridSpec(
            num_scalar_prefetch=0,
            grid=(num_blocks,),
            in_specs=[
                pl.BlockSpec((tb, hw), lambda b: (b, 0)),
                pl.BlockSpec((_CHUNK, hw), lambda b: (0, 0)),   # vx mask, resident
                pl.BlockSpec((_CHUNK, hw), lambda b: (0, 0)),   # vy mask, resident
            ],
            out_specs=pl.BlockSpec((1, 8, 128), lambda b: (b, 0, 0)),
        ),
        compiler_params=pltpu.CompilerParams(
            dimension_semantics=("parallel",),          # megacore-shardable on v7x
            vmem_limit_bytes=48 * 1024 * 1024,
        ),
    )(xf, vx_mask, vy_mask)

    # Tiny final combine of the per-block partials (num_blocks x 6 scalars).
    st = stats[:, 0, :]
    sum_x, min_x, max_x = jnp.sum(st[:, 0]), jnp.min(st[:, 1]), jnp.max(st[:, 2])
    sum_y, min_y, max_y = jnp.sum(st[:, 3]), jnp.min(st[:, 4]), jnp.max(st[:, 5])

    cnt_x = jnp.float32(nb * (h - 1) * w)
    cnt_y = jnp.float32(nb * h * (w - 1))
    mean_x = sum_x / cnt_x
    mean_y = sum_y / cnt_y
    norm_x = (mean_x - min_x) / (max_x - min_x + jnp.float32(0.0001))
    norm_y = (mean_y - min_y) / (max_y - min_y + jnp.float32(0.0001))
    return norm_x + norm_y


if __name__ == "__main__":
    key = jax.random.PRNGKey(0)
    x = jax.random.normal(key, (2, 4, 16, 16), dtype=jnp.float32)

    result = jax.block_until_ready(loss_function_gradient(x))

    # Pure-JAX reference (mirrors the PyTorch forward exactly).
    gx = jnp.abs(x[:, :, 1:, :] - x[:, :, :-1, :])
    gy = jnp.abs(x[:, :, :, 1:] - x[:, :, :, :-1])
    ref = (jnp.mean((gx - gx.min()) / (gx.max() - gx.min() + 0.0001))
           + jnp.mean((gy - gy.min()) / (gy.max() - gy.min() + 0.0001)))

    assert jnp.allclose(result, ref, rtol=1e-5, atol=1e-5), (result, ref)
    print("KERNEL_OK")
</pallas_src>

<mosaic_0001>
module attributes {stable_mosaic.version = 11 : i64} {
  func.func @_grad_stats_kernel(%arg0: i32, %arg1: memref<8x256xf32, #tpu.memory_space<vmem>>, %arg2: memref<8x256xf32, #tpu.memory_space<vmem>>, %arg3: memref<8x256xf32, #tpu.memory_space<vmem>>, %arg4: memref<1x8x128xf32, #tpu.memory_space<vmem>>) attributes {dimension_semantics = [#tpu.dimension_semantics<parallel>], iteration_bounds = array<i64: 1>, scalar_prefetch = 0 : i64, scratch_operands = 0 : i64, tpu.core_type = #tpu.core_type<tc>, window_params = [{transform_indices = @transform_0, window_bounds = array<i64: 8, 256>}, {pipeline_mode = #tpu.pipeline_mode<synchronous>, transform_indices = @transform_1, window_bounds = array<i64: 8, 256>}, {pipeline_mode = #tpu.pipeline_mode<synchronous>, transform_indices = @transform_2, window_bounds = array<i64: 8, 256>}, {transform_indices = @transform_3, window_bounds = array<i64: 1, 8, 128>}]} {
    %c0 = arith.constant 0 : index
    %c0_0 = arith.constant 0 : index
    %0 = vector.load %arg2[%c0, %c0_0] : memref<8x256xf32, #tpu.memory_space<vmem>>, vector<8x256xf32>
    %cst = arith.constant 5.000000e-01 : f32
    %1 = vector.broadcast %cst : f32 to vector<8x256xf32>
    %2 = arith.cmpf ogt, %0, %1 : vector<8x256xf32>
    %c0_1 = arith.constant 0 : index
    %c0_2 = arith.constant 0 : index
    %3 = vector.load %arg3[%c0_1, %c0_2] : memref<8x256xf32, #tpu.memory_space<vmem>>, vector<8x256xf32>
    %cst_3 = arith.constant 5.000000e-01 : f32
    %4 = vector.broadcast %cst_3 : f32 to vector<8x256xf32>
    %5 = arith.cmpf ogt, %3, %4 : vector<8x256xf32>
    %cst_4 = arith.constant 0.000000e+00 : f32
    %6 = vector.broadcast %cst_4 : f32 to vector<8x256xf32>
    %cst_5 = arith.constant 0x7F800000 : f32
    %7 = vector.broadcast %cst_5 : f32 to vector<8x256xf32>
    %c0_6 = arith.constant 0 : index
    %c0_7 = arith.constant 0 : index
    %8 = vector.load %arg1[%c0_6, %c0_7] : memref<8x256xf32, #tpu.memory_space<vmem>>, vector<8x256xf32>
    %c240_i32 = arith.constant 240 : i32
    %9 = tpu.dynamic_rotate %8 by %c240_i32 dim 1 : vector<8x256xf32>, i32 -> vector<8x256xf32>
    %10 = arith.subf %9, %8 : vector<8x256xf32>
    %11 = math.absf %10 : vector<8x256xf32>
    %c255_i32 = arith.constant 255 : i32
    %12 = tpu.dynamic_rotate %8 by %c255_i32 dim 1 : vector<8x256xf32>, i32 -> vector<8x256xf32>
    %13 = arith.subf %12, %8 : vector<8x256xf32>
    %14 = math.absf %13 : vector<8x256xf32>
    %cst_8 = arith.constant 0.000000e+00 : f32
    %15 = vector.broadcast %cst_8 : f32 to vector<8x256xf32>
    %16 = arith.select %2, %11, %15 : vector<8x256xi1>, vector<8x256xf32>
    %cst_9 = arith.constant 0x7F800000 : f32
    %17 = vector.broadcast %cst_9 : f32 to vector<8x256xf32>
    %18 = arith.select %2, %11, %17 : vector<8x256xi1>, vector<8x256xf32>
    %cst_10 = arith.constant 0.000000e+00 : f32
    %19 = vector.broadcast %cst_10 : f32 to vector<8x256xf32>
    %20 = arith.select %5, %14, %19 : vector<8x256xi1>, vector<8x256xf32>
    %cst_11 = arith.constant 0x7F800000 : f32
    %21 = vector.broadcast %cst_11 : f32 to vector<8x256xf32>
    %22 = arith.select %5, %14, %21 : vector<8x256xi1>, vector<8x256xf32>
    %23 = arith.addf %6, %16 : vector<8x256xf32>
    %24 = arith.minimumf %7, %18 : vector<8x256xf32>
    %25 = arith.maximumf %6, %16 : vector<8x256xf32>
    %26 = arith.addf %6, %20 : vector<8x256xf32>
    %27 = arith.minimumf %7, %22 : vector<8x256xf32>
    %28 = arith.maximumf %6, %20 : vector<8x256xf32>
    %29 = vector.shape_cast %23 : vector<8x256xf32> to vector<1x8x256xf32>
    %cst_12 = arith.constant dense<0.000000e+00> : vector<1xf32>
    %30 = vector.multi_reduction <add>, %29, %cst_12 [1, 2] : vector<1x8x256xf32> to vector<1xf32>
    %31 = vector.shape_cast %30 : vector<1xf32> to vector<1x1x1xf32>
    %32 = vector.extract %31[0, 0, 0] : f32 from vector<1x1x1xf32>
    %33 = vector.shape_cast %24 : vector<8x256xf32> to vector<1x8x256xf32>
    %cst_13 = arith.constant dense<0x7F800000> : vector<1xf32>
    %34 = vector.multi_reduction <minimumf>, %33, %cst_13 [1, 2] : vector<1x8x256xf32> to vector<1xf32>
    %35 = vector.shape_cast %34 : vector<1xf32> to vector<1x1x1xf32>
    %36 = vector.extract %35[0, 0, 0] : f32 from vector<1x1x1xf32>
    %37 = vector.shape_cast %25 : vector<8x256xf32> to vector<1x8x256xf32>
    %cst_14 = arith.constant dense<0xFF800000> : vector<1xf32>
    %38 = vector.multi_reduction <maximumf>, %37, %cst_14 [1, 2] : vector<1x8x256xf32> to vector<1xf32>
    %39 = vector.shape_cast %38 : vector<1xf32> to vector<1x1x1xf32>
    %40 = vector.extract %39[0, 0, 0] : f32 from vector<1x1x1xf32>
    %41 = vector.shape_cast %26 : vector<8x256xf32> to vector<1x8x256xf32>
    %cst_15 = arith.constant dense<0.000000e+00> : vector<1xf32>
    %42 = vector.multi_reduction <add>, %41, %cst_15 [1, 2] : vector<1x8x256xf32> to vector<1xf32>
    %43 = vector.shape_cast %42 : vector<1xf32> to vector<1x1x1xf32>
    %44 = vector.extract %43[0, 0, 0] : f32 from vector<1x1x1xf32>
    %45 = vector.shape_cast %27 : vector<8x256xf32> to vector<1x8x256xf32>
    %cst_16 = arith.constant dense<0x7F800000> : vector<1xf32>
    %46 = vector.multi_reduction <minimumf>, %45, %cst_16 [1, 2] : vector<1x8x256xf32> to vector<1xf32>
    %47 = vector.shape_cast %46 : vector<1xf32> to vector<1x1x1xf32>
    %48 = vector.extract %47[0, 0, 0] : f32 from vector<1x1x1xf32>
    %49 = vector.shape_cast %28 : vector<8x256xf32> to vector<1x8x256xf32>
    %cst_17 = arith.constant dense<0xFF800000> : vector<1xf32>
    %50 = vector.multi_reduction <maximumf>, %49, %cst_17 [1, 2] : vector<1x8x256xf32> to vector<1xf32>
    %51 = vector.shape_cast %50 : vector<1xf32> to vector<1x1x1xf32>
    %52 = vector.extract %51[0, 0, 0] : f32 from vector<1x1x1xf32>
    %53 = tpu.iota {dimensions = array<i32: 2>} : vector<1x8x128xi32>
    %cst_18 = arith.constant 0.000000e+00 : f32
    %54 = vector.broadcast %cst_18 : f32 to vector<1x8x128xf32>
    %c0_i32 = arith.constant 0 : i32
    %55 = vector.broadcast %c0_i32 : i32 to vector<1x8x128xi32>
    %56 = arith.cmpi eq, %53, %55 : vector<1x8x128xi32>
    %57 = vector.broadcast %32 : f32 to vector<1x8x128xf32>
    %58 = arith.select %56, %57, %54 : vector<1x8x128xi1>, vector<1x8x128xf32>
    %c1_i32 = arith.constant 1 : i32
    %59 = vector.broadcast %c1_i32 : i32 to vector<1x8x128xi32>
    %60 = arith.cmpi eq, %53, %59 : vector<1x8x128xi32>
    %61 = vector.broadcast %36 : f32 to vector<1x8x128xf32>
    %62 = arith.select %60, %61, %58 : vector<1x8x128xi1>, vector<1x8x128xf32>
    %c2_i32 = arith.constant 2 : i32
    %63 = vector.broadcast %c2_i32 : i32 to vector<1x8x128xi32>
    %64 = arith.cmpi eq, %53, %63 : vector<1x8x128xi32>
    %65 = vector.broadcast %40 : f32 to vector<1x8x128xf32>
    %66 = arith.select %64, %65, %62 : vector<1x8x128xi1>, vector<1x8x128xf32>
    %c3_i32 = arith.constant 3 : i32
    %67 = vector.broadcast %c3_i32 : i32 to vector<1x8x128xi32>
    %68 = arith.cmpi eq, %53, %67 : vector<1x8x128xi32>
    %69 = vector.broadcast %44 : f32 to vector<1x8x128xf32>
    %70 = arith.select %68, %69, %66 : vector<1x8x128xi1>, vector<1x8x128xf32>
    %c4_i32 = arith.constant 4 : i32
    %71 = vector.broadcast %c4_i32 : i32 to vector<1x8x128xi32>
    %72 = arith.cmpi eq, %53, %71 : vector<1x8x128xi32>
    %73 = vector.broadcast %48 : f32 to vector<1x8x128xf32>
    %74 = arith.select %72, %73, %70 : vector<1x8x128xi1>, vector<1x8x128xf32>
    %c5_i32 = arith.constant 5 : i32
    %75 = vector.broadcast %c5_i32 : i32 to vector<1x8x128xi32>
    %76 = arith.cmpi eq, %53, %75 : vector<1x8x128xi32>
    %77 = vector.broadcast %52 : f32 to vector<1x8x128xf32>
    %78 = arith.select %76, %77, %74 : vector<1x8x128xi1>, vector<1x8x128xf32>
    %c0_19 = arith.constant 0 : index
    %c0_20 = arith.constant 0 : index
    %c0_21 = arith.constant 0 : index
    %79 = vector.load %arg4[%c0_19, %c0_20, %c0_21] : memref<1x8x128xf32, #tpu.memory_space<vmem>>, vector<1x8x128xf32>
    tpu.vector_store %arg4[%c0_19, %c0_20, %c0_21], %78 {strides = array<i32>} : memref<1x8x128xf32, #tpu.memory_space<vmem>>, vector<1x8x128xf32>,
    return
  }
  func.func @transform_0(%arg0: i32) -> (i32, i32) {
    %c0_i32 = arith.constant 0 : i32
    %c0_i32_0 = arith.constant 0 : i32
    return %arg0, %c0_i32 : i32, i32
  }
  func.func @transform_1(%arg0: i32) -> (i32, i32) {
    %c0_i32 = arith.constant 0 : i32
    %c0_i32_0 = arith.constant 0 : i32
    %c0_i32_1 = arith.constant 0 : i32
    return %c0_i32, %c0_i32_0 : i32, i32
  }
  func.func @transform_2(%arg0: i32) -> (i32, i32) {
    %c0_i32 = arith.constant 0 : i32
    %c0_i32_0 = arith.constant 0 : i32
    %c0_i32_1 = arith.constant 0 : i32
    return %c0_i32, %c0_i32_0 : i32, i32
  }
  func.func @transform_3(%arg0: i32) -> (i32, i32, i32) {
    %c0_i32 = arith.constant 0 : i32
    %c0_i32_0 = arith.constant 0 : i32
    %c0_i32_1 = arith.constant 0 : i32
    return %arg0, %c0_i32, %c0_i32_0 : i32, i32, i32
  }
}

</mosaic_0001>

<bundles_post_ra>
// kernel: tpu_custom_call.1
= control target key start
LH: loop header
LB: loop body
LE: loop exit
PB: predicated region body
PF: predicated region fallthrough
CT: control target
= control target key end

     0   :  { %8 = vsyncpa [#allocation3], 0  ;;  %s379_s0 = inlined_call_operand.hbm [shape: f32[8,256], index: 0, kind: input, shape index: {}]   ;;  %s380_s1 = inlined_call_operand.hbm [shape: f32[8,256], index: 1, kind: input, shape index: {}]   ;;  %s381_s2 = inlined_call_operand.hbm [shape: f32[8,256], index: 2, kind: input, shape index: {}]   ;;  %s382_s3 = inlined_call_operand.hbm [shape: f32[1,8,128], index: 3, kind: output, shape index: {}]  }
   0x1   :  { %9 = vsyncpa [#allocation6], 0  ;;  %s27_s14 = sshll.u32 %s380_s1, 4  ;;  %s28_s14 = int_to_ptr.hbm [resolvable:$true] %s27_s14 }
   0x2   :  { %10 = vsyncpa [#allocation4], 0  ;;  %s323_s15 = smov [#allocation5]   ;;  %s16_s19 = sshll.u32 %s379_s0, 4  ;;  %s17_s19 = int_to_ptr.hbm [resolvable:$true] %s16_s19 }
   0x3   :  { %s29_s16 = sshll.u32 %s323_s15, 4  ;;  %s324_s20 = smov [#allocation2]   ;;  %s30_s16 = int_to_ptr.vmem [resolvable:$true] %s29_s16 }
   0x4   :  { %32 = dma.hbm_to_vmem [thread:$0]  %s28_s14, 256, %s30_s16, [#allocation6]  }
   0x5   :  { %s18_s21 = sshll.u32 %s324_s20, 4  ;;  %s38_s24 = sshll.u32 %s381_s2, 4  ;;  %s19_s21 = int_to_ptr.vmem [resolvable:$true] %s18_s21  ;;  %s39_s24 = int_to_ptr.hbm [resolvable:$true] %s38_s24 }
   0x6   :  { %21 = dma.hbm_to_vmem [thread:$0]  %s17_s19, 256, %s19_s21, [#allocation3]  }
   0x7   :  { %s325_s1 = smov [#allocation7]  }
   0x8   :  { %s40_s25 = sshll.u32 %s325_s1, 4  ;;  %s41_s25 = int_to_ptr.vmem [resolvable:$true] %s40_s25 }
   0x9   :  { %43 = dma.hbm_to_vmem [thread:$0]  %s39_s24, 256, %s41_s25, [#allocation6]  }
   0xa   :  { %317 = dma.done.wait [#allocation3], 256  }
   0xb   :  { %318 = vsyncadd [#allocation3], 4294967040 }
   0xc   :  { %319 = dma.done.wait [#allocation6], 512  }
   0xd   :  { %320 = vsyncadd [#allocation6], 4294966784  ;;  %v64_v0 = vld [vmem:[#allocation2] sm:$0xff]  ;;  %s326_s0 = smov 112   ;;  %s327_s26 = smov 127   ;;  %v65_v1 = vld [vmem:[#allocation2 + $0x8] sm:$0xff]  ;;  %v70_v2 = vlaneseq }
   0xe   :  { %66 = vrot.lane.b32.xlu0 %v64_v0, %s326_s0  ;;  %79 = vrot.lane.b32.xlu1 %v64_v0, %s327_s26  ;;  %v56_v6 = vld [vmem:[#allocation5] sm:$0xff]  ;;  %v57_v9 = vld [vmem:[#allocation5 + $0x8] sm:$0xff]  ;;  %v60_v10 = vld [vmem:[#allocation7] sm:$0xff]  ;;  %s328_s4 = smov [#allocation8]   ;;  %s192_s8 = sshll.u32 %s382_s3, 4  ;;  %s193_s8 = int_to_ptr.hbm [resolvable:$true] %s192_s8 }
   0xf   :  { %v358_v5 = vand.u32 127, %v70_v2  ;;  %v61_v11 = vld [vmem:[#allocation7 + $0x8] sm:$0xff]  ;;  %vm58_vm2 = vcmp.gt.f32.partialorder %v56_v6, 0.5  ;;  %vm59_vm3 = vcmp.gt.f32.partialorder %v57_v9, 0.5  ;;  %vm62_vm4 = vcmp.gt.f32.partialorder %v60_v10, 0.5  ;;  %s190_s5 = sshll.u32 %s328_s4, 4  ;;  %s191_s5 = int_to_ptr.vmem [resolvable:$true] %s190_s5 }
  0x10   :  { %vm63_vm5 = vcmp.gt.f32.partialorder %v61_v11, 0.5 }
  0x11   :  { %vm72_vm0 = vcmp.lt.s32.totalorder %v358_v5, 112  ;;  %vm83_vm1 = vcmp.lt.s32.totalorder %v358_v5, 127  ;;  %vm166_vm6 = vcmp.eq.s32.totalorder %v358_v5, 0  ;;  %vm169_vm7 = vcmp.eq.s32.totalorder %v358_v5, 1 }
  0x12   :  { %vm172_vm8 = vcmp.eq.s32.totalorder %v358_v5, 2  ;;  %vm175_vm9 = vcmp.eq.s32.totalorder %v358_v5, 3  ;;  %vm178_vm10 = vcmp.eq.s32.totalorder %v358_v5, 4  ;;  %vm181_vm11 = vcmp.eq.s32.totalorder %v358_v5, 5 }
  0x16   :  { %68 = vrot.lane.b32.xlu0 %v65_v1, %s326_s0  ;;  %81 = vrot.lane.b32.xlu1 %v65_v1, %s327_s26 }
  0x80   :  { %v67_v3 = vpop.permute.xlu0 %66  ;;  %v80_v4 = vpop.permute.xlu1 %79 }
  0x88   :  { %v69_v7 = vpop.permute.xlu0 %68  ;;  %v82_v8 = vpop.permute.xlu1 %81 }
  0x89   :  { %v73_v12 = vsel %vm72_vm0, %v67_v3, %v69_v7  ;;  %v74_v13 = vsel %vm72_vm0, %v69_v7, %v67_v3  ;;  %v84_v14 = vsel %vm83_vm1, %v80_v4, %v82_v8  ;;  %v85_v15 = vsel %vm83_vm1, %v82_v8, %v80_v4 }
  0x8a   :  { %v75_v16 = vsub.f32 %v73_v12, %v64_v0  ;;  %v76_v17 = vsub.f32 %v74_v13, %v65_v1  ;;  %v86_v18 = vsub.f32 %v84_v14, %v64_v0  ;;  %v87_v19 = vsub.f32 %v85_v15, %v65_v1 }
  0x8c   :  { %v88_v20 = vand.u32 2147483647, %v86_v18  ;;  %v89_v21 = vand.u32 2147483647, %v87_v19  ;;  %v77_v22 = vand.u32 2147483647, %v75_v16 }
  0x8d   :  { %v78_v23 = vand.u32 2147483647, %v76_v17 }
  0x8e   :  { %v90_v24 = vsel %vm58_vm2, %v77_v22, 0.0  ;;  %v94_v25 = vsel %vm62_vm4, %v88_v20, 0.0  ;;  %v95_v26 = vsel %vm63_vm5, %v89_v21, 0.0  ;;  %v92_v33 = vsel %vm58_vm2, %v77_v22, inf }
  0x8f   :  { %v91_v27 = vsel %vm59_vm3, %v78_v23, 0.0  ;;  %v100_v28 = vmax.f32 %v90_v24, 0.0  ;;  %v136_v29 = vadd.f32 %v95_v26, %v94_v25  ;;  %v93_v34 = vsel %vm59_vm3, %v78_v23, inf }
  0x90   :  { %v101_v30 = vmax.f32 %v91_v27, 0.0  ;;  %v106_v31 = vadd.f32 %v91_v27, %v90_v24  ;;  %v116_v35 = vmin.f32 %v92_v33, %v93_v34  ;;  %v96_v36 = vsel %vm62_vm4, %v88_v20, inf }
  0x91   :  { %137 = vadd.xlane.f32.xlu1 %v136_v29  ;;  %v97_v37 = vsel %vm63_vm5, %v89_v21, inf  ;;  %v104_v39 = vmax.f32 %v94_v25, 0.0  ;;  %v105_v40 = vmax.f32 %v95_v26, 0.0 }
  0x92   :  { %107 = vadd.xlane.f32.xlu2 %v106_v31  ;;  %v126_v32 = vmax.f32 %v100_v28, %v101_v30  ;;  %v146_v38 = vmin.f32 %v96_v36, %v97_v37 }
  0x93   :  { %v156_v41 = vmax.f32 %v104_v39, %v105_v40 }
  0x94   :  { %127 = vmax.xlane.f32.xlu0 %v126_v32 }
  0x9a   :  { %117 = vmin.xlane.f32.xlu2 %v116_v35 }
  0xa2   :  { %147 = vmin.xlane.f32.xlu2 %v146_v38 }
  0xaa   :  { %157 = vmax.xlane.f32.xlu2 %v156_v41 }
 0x104   :  { %v138_v42 = vpop.xlane.xlu1 %137 }
 0x105   :  { %v108_v43 = vpop.xlane.xlu2 %107  ;;  %v139_v45 = vrot.slane %v138_v42, 4 }
 0x106   :  { %v109_v44 = vrot.slane %v108_v43, 4 }
 0x107   :  { %v128_v46 = vpop.xlane.xlu0 %127  ;;  %v140_v50 = vadd.f32 %v139_v45, %v138_v42 }
 0x108   :  { %v110_v47 = vadd.f32 %v109_v44, %v108_v43  ;;  %v129_v48 = vrot.slane %v128_v46, 4 }
 0x109   :  { %v141_v55 = vrot.slane %v140_v50, 2 }
 0x10a   :  { %v111_v49 = vrot.slane %v110_v47, 2  ;;  %v130_v51 = vmax.f32 %v128_v46, %v129_v48 }
 0x10b   :  { %v142_v61 = vadd.f32 %v141_v55, %v140_v50 }
 0x10c   :  { %v112_v52 = vadd.f32 %v111_v49, %v110_v47  ;;  %v131_v53 = vrot.slane %v130_v51, 2 }
 0x10d   :  { %v118_v54 = vpop.xlane.xlu2 %117  ;;  %v143_v4 = vrot.slane %v142_v61, 1 }
 0x10e   :  { %v119_v56 = vrot.slane %v118_v54, 4  ;;  %v113_v57 = vrot.slane %v112_v52, 1  ;;  %v132_v60 = vmax.f32 %v130_v51, %v131_v53 }
 0x10f   :  { %v144_v10 = vadd.f32 %v143_v4, %v142_v61 }
 0x110   :  { %v120_v58 = vmin.f32 %v118_v54, %v119_v56  ;;  %v114_v59 = vadd.f32 %v113_v57, %v112_v52  ;;  %v133_v1 = vrot.slane %v132_v60, 1 }
 0x112   :  { %v121_v62 = vrot.slane %v120_v58, 2  ;;  %203 = vpush %v114_v59  ;;  %v134_v8 = vmax.f32 %v132_v60, %v133_v1 }
 0x114   :  { %v122_v63 = vmin.f32 %v120_v58, %v121_v62 }
 0x115   :  { %v148_v0 = vpop.xlane.xlu2 %147 }
 0x116   :  { %v149_v2 = vrot.slane %v148_v0, 4  ;;  %v123_v3 = vrot.slane %v122_v63, 1 }
 0x118   :  { %v150_v6 = vmin.f32 %v148_v0, %v149_v2  ;;  %v124_v7 = vmin.f32 %v122_v63, %v123_v3 }
 0x11a   :  { %v151_v9 = vrot.slane %v150_v6, 2  ;;  %205 = vpush %v124_v7 }
 0x11b   :  { %207 = vpush %v134_v8 }
 0x11c   :  { %209 = vpush %v144_v10  ;;  %v152_v11 = vmin.f32 %v150_v6, %v151_v9 }
 0x11d   :  { %v158_v12 = vpop.xlane.xlu2 %157 }
 0x11e   :  { %v159_v13 = vrot.slane %v158_v12, 4  ;;  %v153_v14 = vrot.slane %v152_v11, 1 }
 0x120   :  { %v160_v15 = vmax.f32 %v158_v12, %v159_v13  ;;  %v154_v16 = vmin.f32 %v152_v11, %v153_v14 }
 0x122   :  { %v161_v17 = vrot.slane %v160_v15, 2  ;;  %211 = vpush %v154_v16 }
 0x124   :  { %v162_v18 = vmax.f32 %v160_v15, %v161_v17 }
 0x126   :  { %v163_v19 = vrot.slane %v162_v18, 1 }
 0x128   :  { %v164_v20 = vmax.f32 %v162_v18, %v163_v19 }
 0x12a   :  { %213 = vpush %v164_v20 }
 0x143   :  { %s204_s2 = spop %203 }
 0x144   :  { %v167_v21 = vstv %s204_s2 }
 0x145   :  { %v168_v23 = vsel %vm166_vm6, %v167_v21, 0.0 }
 0x14b   :  { %s206_s27 = spop %205 }
 0x14c   :  { %v170_v22 = vstv %s206_s27  ;;  %s208_s28 = spop %207 }
 0x14d   :  { %v171_v24 = vsel %vm169_vm7, %v170_v22, %v168_v23  ;;  %v173_v25 = vstv %s208_s28  ;;  %s210_s29 = spop %209 }
 0x14e   :  { %v174_v26 = vsel %vm172_vm8, %v173_v25, %v171_v24  ;;  %v176_v28 = vstv %s210_s29 }
 0x14f   :  { %v177_v29 = vsel %vm175_vm9, %v176_v28, %v174_v26 }
 0x153   :  { %s212_s30 = spop %211 }
 0x154   :  { %v179_v27 = vstv %s212_s30 }
 0x155   :  { %v180_v30 = vsel %vm178_vm10, %v179_v27, %v177_v29 }
 0x15b   :  { %s214_s9 = spop %213 }
 0x15c   :  { %v182_v31 = vstv %s214_s9 }
 0x15d   :  { %v183_v32 = vsel %vm181_vm11, %v182_v31, %v180_v30 }
 0x15e   :  { %184 = vst [vmem:[#allocation8] sm:$0xff] %v183_v32 }
 0x15f   :  { %195 = dma.vmem_to_hbm [thread:$0]  %s191_s5, 128, %s193_s8, [#allocation4]  }
 0x160   :  { %321 = dma.done.wait [#allocation4], 128  }
 0x161   :  { %322 = vsyncadd [#allocation4], 4294967168 }
 0x162   :  { %200 = vsyncpa [#allocation3], 1 }
 0x163   :  { %201 = vsyncpa [#allocation6], 1 }
 0x164   :  { %202 = vsyncpa [#allocation4], 1 }

</bundles_post_ra>
